<compile_context>
chip_gen: v5e
topology: v5e:2x2
jax: 0.10.0
libtpu: 0.0.40
codegen_flags: <defaults>
</compile_context>

<pallas_src>
import math

import numpy as np
import jax
import jax.numpy as jnp
from jax import lax
from jax.experimental import pallas as pl
from jax.experimental.pallas import tpu as pltpu

# ---- model hyper-params (from the PyTorch module) -------------------------
HIDDEN_D = 8
N_HEADS = 2
MLP_RATIO = 4
D_HEAD = HIDDEN_D // N_HEADS
MLP_D = MLP_RATIO * HIDDEN_D
LN_EPS = 1e-5

# ---- parameter-slab row layout (all starts are multiples of 8 -> aligned sublane loads)
_LN_ROW = 0          # rows 0..3   : g1, b1, g2, b2                  (lanes 0:8)
_QKV_ROW = 8         # rows 8..15  : W_qkv (8 x 24),  row 16 = bias  (lanes 0:24)
_MLP1_ROW = 24       # rows 24..31 : W1    (8 x 32),  row 32 = bias  (lanes 0:32)
_MLP2_ROW = 40       # rows 40..71 : W2    (32 x 8),  row 72 = bias  (lanes 0:8)
_SLAB_ROWS = 80      # 73 used, padded to a multiple of 8
_SLAB_LANES = 128    # lane-dense, aligned single DMA


def _layernorm(x, gamma, beta):
    mu = jnp.mean(x, axis=-1, keepdims=True)
    var = jnp.mean((x - mu) ** 2, axis=-1, keepdims=True)
    return (x - mu) * lax.rsqrt(var + LN_EPS) * gamma + beta


def _gelu_exact(x):
    # PyTorch nn.GELU() default = exact erf formulation
    return 0.5 * x * (1.0 + lax.erf(x * jnp.float32(1.0 / math.sqrt(2.0))))


def vit_block_kernel(x_ref, p_ref, o_ref):
    x = x_ref[...]                                   # (S, D) -- one sequence per grid step
    s = x.shape[0]

    # ---- static sub-slices of the single parameter slab (free) ----
    g1 = p_ref[_LN_ROW + 0:_LN_ROW + 1, 0:HIDDEN_D]
    b1 = p_ref[_LN_ROW + 1:_LN_ROW + 2, 0:HIDDEN_D]
    g2 = p_ref[_LN_ROW + 2:_LN_ROW + 3, 0:HIDDEN_D]
    b2 = p_ref[_LN_ROW + 3:_LN_ROW + 4, 0:HIDDEN_D]
    w_qkv = p_ref[_QKV_ROW:_QKV_ROW + HIDDEN_D, 0:3 * HIDDEN_D]            # (D, 3D)
    b_qkv = p_ref[_QKV_ROW + HIDDEN_D:_QKV_ROW + HIDDEN_D + 1, 0:3 * HIDDEN_D]
    w1 = p_ref[_MLP1_ROW:_MLP1_ROW + HIDDEN_D, 0:MLP_D]                    # (D, MLP_D)
    bm1 = p_ref[_MLP1_ROW + HIDDEN_D:_MLP1_ROW + HIDDEN_D + 1, 0:MLP_D]
    w2 = p_ref[_MLP2_ROW:_MLP2_ROW + MLP_D, 0:HIDDEN_D]                    # (MLP_D, D)
    bm2 = p_ref[_MLP2_ROW + MLP_D:_MLP2_ROW + MLP_D + 1, 0:HIDDEN_D]

    # ---- norm1 + fused-QKV multi-head self-attention + residual ----
    xn = _layernorm(x, g1, b1)                                             # (S, D)
    qkv = jnp.dot(xn, w_qkv, preferred_element_type=jnp.float32) + b_qkv   # (S, 3D)
    q = qkv[:, 0:HIDDEN_D]                    # both heads; 1/sqrt(d_head) folded into Wq/bq
    k = qkv[:, HIDDEN_D:2 * HIDDEN_D]
    v = qkv[:, 2 * HIDDEN_D:3 * HIDDEN_D]

    # Head-block-diagonal K_pad / V_pad of shape (2S, D):
    #   rows 0:S  -> head 0 data in lanes 0:D_HEAD, zeros elsewhere
    #   rows S:2S -> head 1 data in lanes D_HEAD:D, zeros elsewhere
    lane = lax.broadcasted_iota(jnp.int32, (s, HIDDEN_D), 1)
    head0 = lane < D_HEAD
    zf = jnp.float32(0.0)
    k_pad = jnp.concatenate([jnp.where(head0, k, zf), jnp.where(head0, zf, k)], axis=0)
    v_pad = jnp.concatenate([jnp.where(head0, v, zf), jnp.where(head0, zf, v)], axis=0)

    # One MXU call for both heads' scores: (S, 2S); cols 0:S = head 0, cols S:2S = head 1.
    scores = lax.dot_general(q, k_pad, (((1,), (1,)), ((), ())),
                             preferred_element_type=jnp.float32)
    s0 = scores[:, 0:s]
    s1 = scores[:, s:2 * s]
    e0 = jnp.exp(s0 - jnp.max(s0, axis=-1, keepdims=True))
    e1 = jnp.exp(s1 - jnp.max(s1, axis=-1, keepdims=True))
    inv0 = 1.0 / jnp.sum(e0, axis=-1, keepdims=True)      # one exact divide per row
    inv1 = 1.0 / jnp.sum(e1, axis=-1, keepdims=True)
    att = jnp.concatenate([e0 * inv0, e1 * inv1], axis=1)  # (S, 2S)

    # One MXU call for both heads' A@V; each head lands in its final lane slice of (S, D).
    ctx = jnp.dot(att, v_pad, preferred_element_type=jnp.float32)
    out1 = x + ctx

    # ---- norm2 + MLP(GELU) + residual ----
    xn2 = _layernorm(out1, g2, b2)
    h1 = _gelu_exact(jnp.dot(xn2, w1, preferred_element_type=jnp.float32) + bm1)
    h2 = jnp.dot(h1, w2, preferred_element_type=jnp.float32) + bm2
    o_ref[...] = (out1 + h2).astype(o_ref.dtype)


def pack_params(params):
    """One-time, host-side (numpy) packing of the 14 PyTorch-layout tensors into a single
    lane-padded (80, 128) f32 slab. Call ONCE; not part of the per-call path."""
    (g1, b1, wq, bq, wk, bk, wv, bv, g2, b2, w1, bm1, w2, bm2) = [
        np.asarray(p, np.float32) for p in params]
    scale = np.float32(1.0 / math.sqrt(D_HEAD))   # exactly 0.5 here

    def block_diag_t(w, s=np.float32(1.0)):
        m = np.zeros((HIDDEN_D, HIDDEN_D), np.float32)
        for h in range(N_HEADS):
            m[h * D_HEAD:(h + 1) * D_HEAD, h * D_HEAD:(h + 1) * D_HEAD] = w[h].T * s
        return m

    slab = np.zeros((_SLAB_ROWS, _SLAB_LANES), np.float32)
    slab[_LN_ROW + 0, :HIDDEN_D] = g1.reshape(-1)
    slab[_LN_ROW + 1, :HIDDEN_D] = b1.reshape(-1)
    slab[_LN_ROW + 2, :HIDDEN_D] = g2.reshape(-1)
    slab[_LN_ROW + 3, :HIDDEN_D] = b2.reshape(-1)

    w_qkv = np.concatenate([block_diag_t(wq, scale), block_diag_t(wk), block_diag_t(wv)],
                           axis=1)                                   # (D, 3D)
    b_qkv = np.concatenate([bq.reshape(-1) * scale, bk.reshape(-1), bv.reshape(-1)])
    slab[_QKV_ROW:_QKV_ROW + HIDDEN_D, :3 * HIDDEN_D] = w_qkv
    slab[_QKV_ROW + HIDDEN_D, :3 * HIDDEN_D] = b_qkv

    slab[_MLP1_ROW:_MLP1_ROW + HIDDEN_D, :MLP_D] = w1.T
    slab[_MLP1_ROW + HIDDEN_D, :MLP_D] = bm1.reshape(-1)
    slab[_MLP2_ROW:_MLP2_ROW + MLP_D, :HIDDEN_D] = w2.T
    slab[_MLP2_ROW + MLP_D, :HIDDEN_D] = bm2.reshape(-1)
    return jnp.asarray(slab)


def vit_block(x, param_slab):
    B, S, D = x.shape
    assert D == HIDDEN_D
    assert S % 8 == 0, "sequence length must be a multiple of 8 for the (8,128) tiling"
    x2 = x.reshape(B * S, D)

    out = pl.pallas_call(
        vit_block_kernel,
        out_shape=jax.ShapeDtypeStruct((B * S, D), x.dtype),
        grid_spec=pltpu.PrefetchScalarGridSpec(
            num_scalar_prefetch=0,
            grid=(B,),                                   # one sequence per step, megacore-able
            in_specs=[pl.BlockSpec((S, D), lambda b: (b, 0)),
                      pl.BlockSpec((_SLAB_ROWS, _SLAB_LANES), lambda b: (0, 0))],
            out_specs=pl.BlockSpec((S, D), lambda b: (b, 0)),
        ),
        compiler_params=pltpu.CompilerParams(
            dimension_semantics=("parallel",)),
    )(x2, param_slab)
    return out.reshape(B, S, D)


# ---------------- pure-JAX reference (matches the PyTorch module) ----------------
def vit_block_ref(x, params):
    (g1, b1, wq, bq, wk, bk, wv, bv, g2, b2, w1, bm1, w2, bm2) = params

    def ln(v, g, be):
        mu = jnp.mean(v, -1, keepdims=True)
        var = jnp.mean((v - mu) ** 2, -1, keepdims=True)
        return (v - mu) / jnp.sqrt(var + LN_EPS) * g + be

    xn = ln(x, g1, b1)
    outs = []
    for h in range(N_HEADS):
        seq = xn[:, :, h * D_HEAD:(h + 1) * D_HEAD]
        q = jnp.einsum('bsd,ed->bse', seq, wq[h]) + bq[h]
        k = jnp.einsum('bsd,ed->bse', seq, wk[h]) + bk[h]
        v = jnp.einsum('bsd,ed->bse', seq, wv[h]) + bv[h]
        sc = jnp.einsum('bqd,bkd->bqk', q, k) / math.sqrt(D_HEAD)
        att = jax.nn.softmax(sc, axis=-1)
        outs.append(jnp.einsum('bqk,bkd->bqd', att, v))
    out1 = x + jnp.concatenate(outs, axis=-1)
    xn2 = ln(out1, g2, b2)
    h1 = jax.nn.gelu(jnp.einsum('bsd,ed->bse', xn2, w1) + bm1[0], approximate=False)
    h2 = jnp.einsum('bsd,ed->bse', h1, w2) + bm2[0]
    return out1 + h2


if __name__ == "__main__":
    key = jax.random.PRNGKey(0)
    keys = jax.random.split(key, 16)

    B, S = 2, 8

    x = jax.random.normal(keys[0], (B, S, HIDDEN_D), dtype=jnp.float32)

    # Deterministic parameter init (synthetic; small-scale normals / LN defaults).
    g1 = jnp.ones((1, HIDDEN_D), jnp.float32)
    b1 = jnp.zeros((1, HIDDEN_D), jnp.float32)
    g2 = jnp.ones((1, HIDDEN_D), jnp.float32)
    b2 = jnp.zeros((1, HIDDEN_D), jnp.float32)

    wq = 0.2 * jax.random.normal(keys[1], (N_HEADS, D_HEAD, D_HEAD), jnp.float32)
    bq = 0.1 * jax.random.normal(keys[2], (N_HEADS, D_HEAD), jnp.float32)
    wk = 0.2 * jax.random.normal(keys[3], (N_HEADS, D_HEAD, D_HEAD), jnp.float32)
    bk = 0.1 * jax.random.normal(keys[4], (N_HEADS, D_HEAD), jnp.float32)
    wv = 0.2 * jax.random.normal(keys[5], (N_HEADS, D_HEAD, D_HEAD), jnp.float32)
    bv = 0.1 * jax.random.normal(keys[6], (N_HEADS, D_HEAD), jnp.float32)

    w1 = 0.2 * jax.random.normal(keys[7], (MLP_D, HIDDEN_D), jnp.float32)
    bm1 = 0.1 * jax.random.normal(keys[8], (1, MLP_D), jnp.float32)
    w2 = 0.2 * jax.random.normal(keys[9], (HIDDEN_D, MLP_D), jnp.float32)
    bm2 = 0.1 * jax.random.normal(keys[10], (1, HIDDEN_D), jnp.float32)

    params = (g1, b1, wq, bq, wk, bk, wv, bv, g2, b2, w1, bm1, w2, bm2)

    # Pack once (host-side numpy), outside the per-call path.
    param_slab = pack_params(params)

    vit_fn = jax.jit(vit_block)
    out = jax.block_until_ready(vit_fn(x, param_slab))
    ref = jax.block_until_ready(vit_block_ref(x, params))
    np.testing.assert_allclose(np.asarray(out), np.asarray(ref), rtol=1e-5, atol=1e-5)

    print("KERNEL_OK")
</pallas_src>

<mosaic_0001>
module attributes {stable_mosaic.version = 11 : i64} {
  func.func @vit_block_kernel(%arg0: i32, %arg1: memref<8x8xf32, #tpu.memory_space<vmem>>, %arg2: memref<80x128xf32, #tpu.memory_space<vmem>>, %arg3: memref<8x8xf32, #tpu.memory_space<vmem>>) attributes {dimension_semantics = [#tpu.dimension_semantics<parallel>], iteration_bounds = array<i64: 2>, scalar_prefetch = 0 : i64, scratch_operands = 0 : i64, tpu.core_type = #tpu.core_type<tc>, window_params = [{transform_indices = @transform_0, window_bounds = array<i64: 8, 8>}, {pipeline_mode = #tpu.pipeline_mode<synchronous>, transform_indices = @transform_1, window_bounds = array<i64: 80, 128>}, {transform_indices = @transform_2, window_bounds = array<i64: 8, 8>}]} {
    %c0 = arith.constant 0 : index
    %c0_0 = arith.constant 0 : index
    %0 = vector.load %arg1[%c0, %c0_0] : memref<8x8xf32, #tpu.memory_space<vmem>>, vector<8x8xf32>
    %c0_1 = arith.constant 0 : index
    %c0_2 = arith.constant 0 : index
    %1 = vector.load %arg2[%c0_1, %c0_2] : memref<80x128xf32, #tpu.memory_space<vmem>>, vector<1x8xf32>
    %c1 = arith.constant 1 : index
    %c0_3 = arith.constant 0 : index
    %2 = vector.load %arg2[%c1, %c0_3] : memref<80x128xf32, #tpu.memory_space<vmem>>, vector<1x8xf32>
    %c2 = arith.constant 2 : index
    %c0_4 = arith.constant 0 : index
    %3 = vector.load %arg2[%c2, %c0_4] : memref<80x128xf32, #tpu.memory_space<vmem>>, vector<1x8xf32>
    %c3 = arith.constant 3 : index
    %c0_5 = arith.constant 0 : index
    %4 = vector.load %arg2[%c3, %c0_5] : memref<80x128xf32, #tpu.memory_space<vmem>>, vector<1x8xf32>
    %c8 = arith.constant 8 : index
    %c0_6 = arith.constant 0 : index
    %5 = vector.load %arg2[%c8, %c0_6] : memref<80x128xf32, #tpu.memory_space<vmem>>, vector<8x24xf32>
    %c16 = arith.constant 16 : index
    %c0_7 = arith.constant 0 : index
    %6 = vector.load %arg2[%c16, %c0_7] : memref<80x128xf32, #tpu.memory_space<vmem>>, vector<1x24xf32>
    %c24 = arith.constant 24 : index
    %c0_8 = arith.constant 0 : index
    %7 = vector.load %arg2[%c24, %c0_8] : memref<80x128xf32, #tpu.memory_space<vmem>>, vector<8x32xf32>
    %c32 = arith.constant 32 : index
    %c0_9 = arith.constant 0 : index
    %8 = vector.load %arg2[%c32, %c0_9] : memref<80x128xf32, #tpu.memory_space<vmem>>, vector<1x32xf32>
    %c40 = arith.constant 40 : index
    %c0_10 = arith.constant 0 : index
    %9 = vector.load %arg2[%c40, %c0_10] : memref<80x128xf32, #tpu.memory_space<vmem>>, vector<32x8xf32>
    %c72 = arith.constant 72 : index
    %c0_11 = arith.constant 0 : index
    %10 = vector.load %arg2[%c72, %c0_11] : memref<80x128xf32, #tpu.memory_space<vmem>>, vector<1x8xf32>
    %cst = arith.constant dense<0.000000e+00> : vector<8xf32>
    %11 = vector.multi_reduction <add>, %0, %cst [1] : vector<8x8xf32> to vector<8xf32>
    %12 = vector.shape_cast %11 : vector<8xf32> to vector<8x1xf32>
    %cst_12 = arith.constant 8.000000e+00 : f32
    %13 = vector.broadcast %cst_12 : f32 to vector<8x1xf32>
    %14 = arith.divf %12, %13 : vector<8x1xf32>
    %15 = vector.broadcast %14 : vector<8x1xf32> to vector<8x8xf32>
    %16 = arith.subf %0, %15 : vector<8x8xf32>
    %17 = arith.mulf %16, %16 : vector<8x8xf32>
    %cst_13 = arith.constant dense<0.000000e+00> : vector<8xf32>
    %18 = vector.multi_reduction <add>, %17, %cst_13 [1] : vector<8x8xf32> to vector<8xf32>
    %19 = vector.shape_cast %18 : vector<8xf32> to vector<8x1xf32>
    %cst_14 = arith.constant 8.000000e+00 : f32
    %20 = vector.broadcast %cst_14 : f32 to vector<8x1xf32>
    %21 = arith.divf %19, %20 : vector<8x1xf32>
    %22 = vector.broadcast %14 : vector<8x1xf32> to vector<8x8xf32>
    %23 = arith.subf %0, %22 : vector<8x8xf32>
    %cst_15 = arith.constant 9.99999974E-6 : f32
    %24 = vector.broadcast %cst_15 : f32 to vector<8x1xf32>
    %25 = arith.addf %21, %24 : vector<8x1xf32>
    %26 = math.rsqrt %25 : vector<8x1xf32>
    %27 = vector.broadcast %26 : vector<8x1xf32> to vector<8x8xf32>
    %28 = arith.mulf %23, %27 : vector<8x8xf32>
    %29 = vector.broadcast %1 : vector<1x8xf32> to vector<8x8xf32>
    %30 = arith.mulf %28, %29 : vector<8x8xf32>
    %31 = vector.broadcast %2 : vector<1x8xf32> to vector<8x8xf32>
    %32 = arith.addf %30, %31 : vector<8x8xf32>
    %cst_16 = arith.constant dense<0.000000e+00> : vector<8x24xf32>
    %33 = tpu.matmul %32, %5, %cst_16 {dimension_numbers = #tpu.dot_dimension_numbers<[1], [0], [0], [1], [0, 0, 1, 1], [], []>} : vector<8x8xf32>, vector<8x24xf32>, vector<8x24xf32> -> vector<8x24xf32>
    %34 = vector.broadcast %6 : vector<1x24xf32> to vector<8x24xf32>
    %35 = arith.addf %33, %34 : vector<8x24xf32>
    %36 = vector.extract_strided_slice %35 {offsets = [0, 0], sizes = [8, 8], strides = [1, 1]} : vector<8x24xf32> to vector<8x8xf32>
    %37 = vector.extract_strided_slice %35 {offsets = [0, 8], sizes = [8, 8], strides = [1, 1]} : vector<8x24xf32> to vector<8x8xf32>
    %38 = vector.extract_strided_slice %35 {offsets = [0, 16], sizes = [8, 8], strides = [1, 1]} : vector<8x24xf32> to vector<8x8xf32>
    %39 = tpu.iota {dimensions = array<i32: 1>} : vector<8x8xi32>
    %c4_i32 = arith.constant 4 : i32
    %40 = vector.broadcast %c4_i32 : i32 to vector<8x8xi32>
    %41 = arith.cmpi slt, %39, %40 : vector<8x8xi32>
    %cst_17 = arith.constant 0.000000e+00 : f32
    %42 = vector.broadcast %cst_17 : f32 to vector<8x8xf32>
    %43 = arith.select %41, %37, %42 : vector<8x8xi1>, vector<8x8xf32>
    %cst_18 = arith.constant 0.000000e+00 : f32
    %44 = vector.broadcast %cst_18 : f32 to vector<8x8xf32>
    %45 = arith.select %41, %44, %37 : vector<8x8xi1>, vector<8x8xf32>
    %46 = tpu.concatenate %43, %45 in 0 : vector<8x8xf32>, vector<8x8xf32> -> vector<16x8xf32>
    %cst_19 = arith.constant 0.000000e+00 : f32
    %47 = vector.broadcast %cst_19 : f32 to vector<8x8xf32>
    %48 = arith.select %41, %38, %47 : vector<8x8xi1>, vector<8x8xf32>
    %cst_20 = arith.constant 0.000000e+00 : f32
    %49 = vector.broadcast %cst_20 : f32 to vector<8x8xf32>
    %50 = arith.select %41, %49, %38 : vector<8x8xi1>, vector<8x8xf32>
    %51 = tpu.concatenate %48, %50 in 0 : vector<8x8xf32>, vector<8x8xf32> -> vector<16x8xf32>
    %cst_21 = arith.constant dense<0.000000e+00> : vector<8x16xf32>
    %52 = tpu.matmul %36, %46, %cst_21 {dimension_numbers = #tpu.dot_dimension_numbers<[1], [1], [0], [0], [0, 0, 1, 0], [], []>} : vector<8x8xf32>, vector<16x8xf32>, vector<8x16xf32> -> vector<8x16xf32>
    %53 = vector.extract_strided_slice %52 {offsets = [0, 0], sizes = [8, 8], strides = [1, 1]} : vector<8x16xf32> to vector<8x8xf32>
    %54 = vector.extract_strided_slice %52 {offsets = [0, 8], sizes = [8, 8], strides = [1, 1]} : vector<8x16xf32> to vector<8x8xf32>
    %cst_22 = arith.constant dense<0xFF800000> : vector<8xf32>
    %55 = vector.multi_reduction <maximumf>, %53, %cst_22 [1] : vector<8x8xf32> to vector<8xf32>
    %56 = vector.shape_cast %55 : vector<8xf32> to vector<8x1xf32>
    %57 = vector.broadcast %56 : vector<8x1xf32> to vector<8x8xf32>
    %58 = arith.subf %53, %57 : vector<8x8xf32>
    %59 = math.exp %58 : vector<8x8xf32>
    %cst_23 = arith.constant dense<0xFF800000> : vector<8xf32>
    %60 = vector.multi_reduction <maximumf>, %54, %cst_23 [1] : vector<8x8xf32> to vector<8xf32>
    %61 = vector.shape_cast %60 : vector<8xf32> to vector<8x1xf32>
    %62 = vector.broadcast %61 : vector<8x1xf32> to vector<8x8xf32>
    %63 = arith.subf %54, %62 : vector<8x8xf32>
    %64 = math.exp %63 : vector<8x8xf32>
    %cst_24 = arith.constant dense<0.000000e+00> : vector<8xf32>
    %65 = vector.multi_reduction <add>, %59, %cst_24 [1] : vector<8x8xf32> to vector<8xf32>
    %66 = vector.shape_cast %65 : vector<8xf32> to vector<8x1xf32>
    %cst_25 = arith.constant 1.000000e+00 : f32
    %67 = vector.broadcast %cst_25 : f32 to vector<8x1xf32>
    %68 = arith.divf %67, %66 : vector<8x1xf32>
    %cst_26 = arith.constant dense<0.000000e+00> : vector<8xf32>
    %69 = vector.multi_reduction <add>, %64, %cst_26 [1] : vector<8x8xf32> to vector<8xf32>
    %70 = vector.shape_cast %69 : vector<8xf32> to vector<8x1xf32>
    %cst_27 = arith.constant 1.000000e+00 : f32
    %71 = vector.broadcast %cst_27 : f32 to vector<8x1xf32>
    %72 = arith.divf %71, %70 : vector<8x1xf32>
    %73 = vector.broadcast %68 : vector<8x1xf32> to vector<8x8xf32>
    %74 = arith.mulf %59, %73 : vector<8x8xf32>
    %75 = vector.broadcast %72 : vector<8x1xf32> to vector<8x8xf32>
    %76 = arith.mulf %64, %75 : vector<8x8xf32>
    %77 = tpu.concatenate %74, %76 in 1 : vector<8x8xf32>, vector<8x8xf32> -> vector<8x16xf32>
    %cst_28 = arith.constant dense<0.000000e+00> : vector<8x8xf32>
    %78 = tpu.matmul %77, %51, %cst_28 {dimension_numbers = #tpu.dot_dimension_numbers<[1], [0], [0], [1], [0, 0, 1, 1], [], []>} : vector<8x16xf32>, vector<16x8xf32>, vector<8x8xf32> -> vector<8x8xf32>
    %79 = arith.addf %0, %78 : vector<8x8xf32>
    %cst_29 = arith.constant dense<0.000000e+00> : vector<8xf32>
    %80 = vector.multi_reduction <add>, %79, %cst_29 [1] : vector<8x8xf32> to vector<8xf32>
    %81 = vector.shape_cast %80 : vector<8xf32> to vector<8x1xf32>
    %cst_30 = arith.constant 8.000000e+00 : f32
    %82 = vector.broadcast %cst_30 : f32 to vector<8x1xf32>
    %83 = arith.divf %81, %82 : vector<8x1xf32>
    %84 = vector.broadcast %83 : vector<8x1xf32> to vector<8x8xf32>
    %85 = arith.subf %79, %84 : vector<8x8xf32>
    %86 = arith.mulf %85, %85 : vector<8x8xf32>
    %cst_31 = arith.constant dense<0.000000e+00> : vector<8xf32>
    %87 = vector.multi_reduction <add>, %86, %cst_31 [1] : vector<8x8xf32> to vector<8xf32>
    %88 = vector.shape_cast %87 : vector<8xf32> to vector<8x1xf32>
    %cst_32 = arith.constant 8.000000e+00 : f32
    %89 = vector.broadcast %cst_32 : f32 to vector<8x1xf32>
    %90 = arith.divf %88, %89 : vector<8x1xf32>
    %91 = vector.broadcast %83 : vector<8x1xf32> to vector<8x8xf32>
    %92 = arith.subf %79, %91 : vector<8x8xf32>
    %cst_33 = arith.constant 9.99999974E-6 : f32
    %93 = vector.broadcast %cst_33 : f32 to vector<8x1xf32>
    %94 = arith.addf %90, %93 : vector<8x1xf32>
    %95 = math.rsqrt %94 : vector<8x1xf32>
    %96 = vector.broadcast %95 : vector<8x1xf32> to vector<8x8xf32>
    %97 = arith.mulf %92, %96 : vector<8x8xf32>
    %98 = vector.broadcast %3 : vector<1x8xf32> to vector<8x8xf32>
    %99 = arith.mulf %97, %98 : vector<8x8xf32>
    %100 = vector.broadcast %4 : vector<1x8xf32> to vector<8x8xf32>
    %101 = arith.addf %99, %100 : vector<8x8xf32>
    %cst_34 = arith.constant dense<0.000000e+00> : vector<8x32xf32>
    %102 = tpu.matmul %101, %7, %cst_34 {dimension_numbers = #tpu.dot_dimension_numbers<[1], [0], [0], [1], [0, 0, 1, 1], [], []>} : vector<8x8xf32>, vector<8x32xf32>, vector<8x32xf32> -> vector<8x32xf32>
    %103 = vector.broadcast %8 : vector<1x32xf32> to vector<8x32xf32>
    %104 = arith.addf %102, %103 : vector<8x32xf32>
    %cst_35 = arith.constant 5.000000e-01 : f32
    %105 = vector.broadcast %cst_35 : f32 to vector<8x32xf32>
    %106 = arith.mulf %105, %104 : vector<8x32xf32>
    %cst_36 = arith.constant 0.707106769 : f32
    %107 = vector.broadcast %cst_36 : f32 to vector<8x32xf32>
    %108 = arith.mulf %104, %107 : vector<8x32xf32>
    %109 = math.erf %108 : vector<8x32xf32>
    %cst_37 = arith.constant 1.000000e+00 : f32
    %110 = vector.broadcast %cst_37 : f32 to vector<8x32xf32>
    %111 = arith.addf %110, %109 : vector<8x32xf32>
    %112 = arith.mulf %106, %111 : vector<8x32xf32>
    %cst_38 = arith.constant dense<0.000000e+00> : vector<8x8xf32>
    %113 = tpu.matmul %112, %9, %cst_38 {dimension_numbers = #tpu.dot_dimension_numbers<[1], [0], [0], [1], [0, 0, 1, 1], [], []>} : vector<8x32xf32>, vector<32x8xf32>, vector<8x8xf32> -> vector<8x8xf32>
    %114 = vector.broadcast %10 : vector<1x8xf32> to vector<8x8xf32>
    %115 = arith.addf %113, %114 : vector<8x8xf32>
    %116 = arith.addf %79, %115 : vector<8x8xf32>
    %c0_39 = arith.constant 0 : index
    %c0_40 = arith.constant 0 : index
    %117 = vector.load %arg3[%c0_39, %c0_40] : memref<8x8xf32, #tpu.memory_space<vmem>>, vector<8x8xf32>
    tpu.vector_store %arg3[%c0_39, %c0_40], %116 {strides = array<i32>} : memref<8x8xf32, #tpu.memory_space<vmem>>, vector<8x8xf32>,
    return
  }
  func.func @transform_0(%arg0: i32) -> (i32, i32) {
    %c0_i32 = arith.constant 0 : i32
    %c0_i32_0 = arith.constant 0 : i32
    return %arg0, %c0_i32 : i32, i32
  }
  func.func @transform_1(%arg0: i32) -> (i32, i32) {
    %c0_i32 = arith.constant 0 : i32
    %c0_i32_0 = arith.constant 0 : i32
    %c0_i32_1 = arith.constant 0 : i32
    return %c0_i32, %c0_i32_0 : i32, i32
  }
  func.func @transform_2(%arg0: i32) -> (i32, i32) {
    %c0_i32 = arith.constant 0 : i32
    %c0_i32_0 = arith.constant 0 : i32
    return %arg0, %c0_i32 : i32, i32
  }
}

</mosaic_0001>

<bundles_post_ra>
// kernel: vit_block.1
= control target key start
LH: loop header
LB: loop body
LE: loop exit
PB: predicated region body
PF: predicated region fallthrough
CT: control target
= control target key end

     0   :  { %7 = vsyncpa [#allocation3], 0  ;;  %s1034_s0 = inlined_call_operand.hbm [shape: f32[16,8], index: 0, kind: input, shape index: {}]   ;;  %s1035_s1 = inlined_call_operand.hbm [shape: f32[80,128], index: 1, kind: input, shape index: {}]   ;;  %s1036_s2 = inlined_call_operand.hbm [shape: f32[16,8], index: 2, kind: output, shape index: {}]  }
   0x1   :  { %9 = vsyncpa [#allocation3 + $0x1], 0 }
   0x2   :  { %10 = vsyncpa [#allocation6], 0 }
   0x3   :  { %11 = vsyncpa [#allocation4], 0 }
   0x4   :  { %13 = vsyncpa [#allocation4 + $0x1], 0  ;;  %s853_s9 = smov 0   ;;  %s855_s10 = smov 0  }
   0x5   :  { %s857_s11 = smov 0   ;;  %s859_s12 = smov 0  }
   0x6 LB: > { %s108_s15 = sshll.u32 %s1035_s1, 4  ;;  %s877_s16 = sadd.s32 4294967295, %s830_s12   ;;  %s830_s12 = sphi %s859_s12, %s1046_s12   ;;  %s826_s11 = sphi %s857_s11, %s1045_s11   ;;  %s822_s10 = sphi %s855_s10, %s1044_s10   ;;  %s818_s9 = sphi %s853_s9, %s1043_s9   ;;  %s109_s15 = int_to_ptr.hbm [resolvable:$true] %s108_s15 }
   0x7   : > { %p591_p0 = scmp.ge.s32.totalorder %s830_s12, 1  ;;  %p40_p1 = scmp.eq.s32.totalorder %s877_s16, 0 }
   0x8   : > { %p97_p2 = scmp.lt.s32.totalorder %s830_s12, 3  ;;  %s832_s18 = smov [#allocation5]  }
   0x9   : > { %s110_s19 = sshll.u32 %s832_s18, 4  ;;  %s833_s20 = smov 128   ;;  %s111_s19 = int_to_ptr.vmem [resolvable:$true] %s110_s19 }
   0xa   : > { %p882_p3 = pnand %p591_p0, %p97_p2  ;;  %s834_s21 = smov 8  }
   0xb   : > { %s590_s22 = sadd.s32 4294967294, %s830_s12   ;;  %s893_s23 = sadd.s32 1, %s830_s12  }
   0xc   : > { %p623_p4 = pneg %p882_p3  ;;  %s26_s24 = sadd.s32 1, %s826_s11 }
   0xd   : > { %s23_s25 = ssub.s32 %s830_s12, %s893_s23  ;;  %p33_p7 = scmp.ne.s32.totalorder %s826_s11, %s822_s10 }
   0xe   : > { %p624_p6 = pnand %p623_p4, %p40_p1  ;;  %p24_p8 = scmp.eq.s32.totalorder %s23_s25, 0 }
   0xf   : > { %p34_p9 = scmp.eq.s32.totalorder %s830_s12, 0  ;;  %p39_p10 = scmp.ne.s32.totalorder %s822_s10, %s818_s9 }
  0x10   : > { %626 = dma.hbm_to_vmem [thread:$0]  (!%p624_p6), %s109_s15, 1280, %s111_s19, [#allocation6], %s833_s20, %s833_s20, %s834_s21  }
  0x11   : > { %p84_p11 = scmp.eq.s32.totalorder %s877_s16, 1  ;;  %p909_p12 = por %p40_p1, %p39_p10 }
  0x12   : > { %s905_s26 = scalar_select %p24_p8, %s826_s11, %s26_s24  }
  0x13   : > { %p913_p13 = por %p84_p11, %p33_p7  ;;  %p90_p0 = scmp.eq.s32.totalorder %s590_s22, 1 }
  0x14   : > { %p35_p2 = por %p34_p9, %p33_p7  ;;  %s124_s29 = sand.u32 1, %s826_s11  }
  0x15   : > { %p918_p4 = por %p90_p0, %p39_p10  ;;  %p636_p6 = scmp.lt.s32.totalorder %s830_s12, 2 }
  0x16   : > { %s594_s3 = sshll.u32 %s124_s29, 3  ;;  %s595_s4 = sshll.u32 %s830_s12, 3 }
  0x17   : > { %s132_s7 = scalar_lea.hbm %s1034_s0, %s595_s4  ;;  %s128_s13 = scalar_lea.vmem [#allocation2], %s594_s3 }
  0x18   : > { %s134_s8 = sshll.u32 %s132_s7, 4  ;;  %s136_s14 = sshll.u32 %s128_s13, 4  ;;  %s135_s8 = int_to_ptr.hbm [resolvable:$true] %s134_s8  ;;  %s137_s14 = int_to_ptr.vmem [resolvable:$true] %s136_s14 }
  0x19   : > { %p927_p8 = pnand %p636_p6, %p35_p2  ;;  %s125_s18 = scalar_lea.sflag [#allocation3], %s124_s29 }
  0x1a   : > { %s730_s19 = sshra.s32 %s135_s8, 4  ;;  %s737_s24 = scalar_lea.hbm %s1034_s0, 16  ;;  %s731_s19 = int_to_ptr.hbm [resolvable:$true] %s730_s19 }
  0x1b   : > { %s732_s20 = scalar_lea.hbm %s731_s19, 8  ;;  %p734_p9 = pneg %p927_p8 }
  0x1c   : > { %p733_p7 = scmp.ne.s32.totalorder %s731_s19, %s732_s20  ;;  %p738_p0 = scmp.lt.s32.totalorder %s731_s19, %s1034_s0 }
  0x1d   : > { %p739_p2 = scmp.lt.s32.totalorder %s737_s24, %s732_s20 }
  0x1e   : > { %p735_p10 = pnand %p734_p9, %p733_p7 }
  0x1f   : > { %p740_p6 = por %p739_p2, %p738_p0 }
  0x20   : > { %p736_p11 = pneg %p735_p10 }
  0x22   : > { %p741_p5 = pnand %p740_p6, %p736_p11 }
  0x24   : > { %744 = shalt.err (!%p741_p5)
}
  0x25   : > { %630 = dma.hbm_to_vmem [thread:$0]  (!%p927_p8), %s135_s8, 128, %s137_s14, %s125_s18  }
  0x26   : > { %145 = sbr.rel (%p882_p3) target bundleno = 1770 (0x6ea), region = 28  ;;  %s944_s29 = sand.u32 (!%p882_p3), 1, %s822_s10  }
  0x27   : > { %s597_s4 = sshll.u32 (!%p882_p3), %s944_s29, 3  ;;  %s148_s5 = scalar_lea.sflag (!%p882_p3), [#allocation3], %s944_s29 }
  0x28   : > { %s151_s6 = scalar_lea.vmem (!%p882_p3), [#allocation2], %s597_s4 }
  0x2b   : > { %805 = dma.done.wait (%p909_p12), %s148_s5, 128  }
  0x2c   : > { %807 = vsyncadd (%p909_p12), %s148_s5, 4294967168 }
  0x2d   : > { %809 = dma.done.wait (%p40_p1), [#allocation6], 1280  }
  0x2e   : > { %811 = vsyncadd (%p40_p1), [#allocation6], 4294966016  ;;  %vm192_vm0 = vcmask 64512   ;;  %v958_v0 = vld [vmem:[%s151_s6] sm:$0xff]  ;;  %v835_v2 = vmov 8.0   ;;  %v183_v14 = vld [vmem:[#allocation5 + $0x8] sm:$0xff]  ;;  %v250_v33 = vlaneseq }
  0x2f   : > { %v193_v1 = vsel %vm192_vm0, %v958_v0, 0.0  ;;  %684 = vrcp.f32 %v835_v2  ;;  %245 = vmatpush.msra.mxu0 %v183_v14  ;;  %v677_v24 = vld [vmem:[#allocation5] ss:$0 sm:$0xff]  ;;  %v678_v27 = vld [vmem:[#allocation5 + $0x1] ss:$0 sm:$0xff]  ;;  %s836_s17 = smov 120  }
  0x30   : > { %194 = vadd.xlane.f32.xlu0 %v193_v1  ;;  %v679_v30 = vld [vmem:[#allocation5 + $0x10] ss:$0 sm:$0xff]  ;;  %v969_v34 = vand.u32 127, %v250_v33  ;;  %vm298_vm6 = vcmask 130112   ;;  %s837_s27 = smov 112   ;;  %s612_s7 = sshll.u32 %s877_s16, 3 }
  0x31   : > { %v680_v33 = vld [vmem:[#allocation5 + $0x2] ss:$0 sm:$0xff]  ;;  %s505_s14 = scalar_lea.hbm %s1036_s2, %s612_s7  ;;  %s177_s15 = scalar_lea.vmem [#allocation7], %s597_s4 }
  0x32   : > { %vm252_vm5 = vcmp.lt.s32.totalorder %v969_v34, 4  ;;  %s507_s18 = sshll.u32 %s177_s15, 4  ;;  %s509_s19 = sshll.u32 %s505_s14, 4  ;;  %s508_s18 = int_to_ptr.vmem [resolvable:$true] %s507_s18  ;;  %s510_s19 = int_to_ptr.hbm [resolvable:$true] %s509_s19 }
  0x33   : > { %vm604_vm15 = vmneg %vm252_vm5  ;;  %s495_s20 = scalar_lea.sflag [#allocation4], %s944_s29  ;;  %s774_s16 = sshra.s32 %s510_s19, 4  ;;  %s775_s16 = int_to_ptr.hbm [resolvable:$true] %s774_s16 }
  0x34   : > { %s776_s21 = scalar_lea.hbm %s775_s16, 8  ;;  %s780_s25 = scalar_lea.hbm %s1036_s2, 16 }
  0x35   : > { %v685_v3 = vpop.eup %684  ;;  %p777_p1 = scmp.ne.s32.totalorder %s775_s16, %s776_s21  ;;  %p781_p12 = scmp.lt.s32.totalorder %s775_s16, %s1036_s2 }
  0x36   : > { %v197_v4 = vmul.f32 8.0, %v685_v3  ;;  %vm201_vm1 = vweird.f32 %v685_v3  ;;  %p782_p8 = scmp.lt.s32.totalorder %s780_s25, %s776_s21 }
  0x37   : > { %p778_p3 = pnand %p777_p1, %p913_p13 }
  0x38   : > { %v198_v5 = vsub.f32 1.0, %v197_v4  ;;  %p783_p7 = por %p782_p8, %p781_p12 }
  0x39   : > { %p779_p5 = pneg %p778_p3 }
  0x3a   : > { %v199_v6 = vmul.f32 %v685_v3, %v198_v5 }
  0x3b   : > { %p784_p9 = pnand %p783_p7, %p779_p5 }
  0x3c   : > { %v200_v7 = vadd.f32 %v685_v3, %v199_v6 }
  0x3e   : > { %v962_v8 = vsel %vm201_vm1, %v685_v3, %v200_v7  ;;  %vm348_vm1 = vcmask 130048  }
  0xa3   : > { %v195_v9 = vpop.xlane.xlu0 %194 }
  0xa4   : > { %v203_v10 = vmul.f32 %v962_v8, %v195_v9 }
  0xa6   : > { %v204_v11 = vsub.f32 %v958_v0, %v203_v10 }
  0xa8   : > { %v205_v12 = vmul.f32 %v204_v11, %v204_v11 }
  0xaa   : > { %v206_v13 = vsel %vm192_vm0, %v205_v12, 0.0 }
  0xab   : > { %207 = vadd.xlane.f32.xlu0 %v206_v13 }
 0x11e   : > { %v208_v15 = vpop.xlane.xlu0 %207 }
 0x11f   : > { %v209_v16 = vmul.f32 %v208_v15, %v962_v8 }
 0x121   : > { %v210_v17 = vadd.f32 1e-05, %v209_v16 }
 0x123   : > { %686 = vrsqrt.f32 %v210_v17  ;;  %vm217_vm3 = vweird.f32 %v210_v17 }
 0x129   : > { %v687_v18 = vpop.eup %686 }
 0x12a   : > { %v212_v19 = vmul.f32 %v687_v18, %v210_v17  ;;  %vm218_vm2 = vweird.f32 %v687_v18 }
 0x12b   : > { %vm219_vm4 = vmor %vm217_vm3, %vm218_vm2 }
 0x12c   : > { %v213_v20 = vmul.f32 %v687_v18, %v212_v19 }
 0x12e   : > { %v214_v21 = vmul.f32 0.5, %v213_v20 }
 0x130   : > { %v215_v22 = vsub.f32 1.5, %v214_v21 }
 0x132   : > { %v216_v23 = vmul.f32 %v687_v18, %v215_v22 }
 0x134   : > { %v220_v25 = vsel %vm219_vm4, %v687_v18, %v216_v23 }
 0x135   : > { %v221_v26 = vmul.f32 %v220_v25, %v204_v11 }
 0x137   : > { %v223_v28 = vmul.f32 %v677_v24, %v221_v26  ;;  %v185_v24 = vld [vmem:[#allocation5 + $0x18] sm:$0xff] }
 0x138   : > { %418 = vmatpush.msra.mxu3 %v185_v24 }
 0x139   : > { %v225_v29 = vadd.f32 %v678_v27, %v223_v28 }
 0x13b   : > { %600 = vmatmul.msk.f32.vlgmr.msra.gmra.mxu0 %vm192_vm0, %v225_v29 }
 0x1b8   : > { %v247_v31 = vpop.f32.mrf.mxu0 }
 0x1b9   : > { %v248_v32 = vadd.f32 %v679_v30, %v247_v31 }
 0x1bb   : > { %254 = vrot.lane.b32.xlu1 %v248_v32, %s836_s17 }
 0x22d   : > { %v255_v35 = vpop.permute.xlu1 %254 }
 0x22e   : > { %v258_v36 = vsel %vm252_vm5, 0.0, %v255_v35  ;;  %v257_v37 = vsel %vm252_vm5, %v255_v35, 0.0 }
 0x22f   : > { %601 = vmatpush.xpose.msk.msra.mxu1 %vm192_vm0, %v258_v36  ;;  %v681_v36 = vld [vmem:[#allocation5 + $0x3] ss:$0 sm:$0xff] }
 0x233   : > { %602 = vmatpush.xpose.msk.msra.mxu1 %vm192_vm0, %v257_v37 }
 0x236   : > { %603 = vmatmul.msk.f32.vlgmr.msra.gmra.mxu1 %vm192_vm0, %v248_v32 }
 0x2b3   : > { %v289_v38 = vpop.f32.mrf.mxu1 }
 0x2b4   : > { %v299_v39 = vsel %vm298_vm6, %v289_v38, -inf  ;;  %v292_v40 = vsel %vm192_vm0, %v289_v38, -inf }
 0x2b5   : > { %300 = vmax.xlane.f32.xlu1 %v299_v39  ;;  %293 = vmax.xlane.f32.xlu2 %v292_v40 }
 0x328   : > { %v301_v41 = vpop.xlane.xlu1 %300  ;;  %v294_v42 = vpop.xlane.xlu2 %293 }
 0x329   : > { %v302_v43 = vsub.f32 %v289_v38, %v301_v41  ;;  %v295_v44 = vsub.f32 %v289_v38, %v294_v42 }
 0x32b   : > { %v303_v45 = vmul.f32 1.442695, %v302_v43  ;;  %v296_v46 = vmul.f32 1.442695, %v295_v44 }
 0x32d   : > { %688 = vpow2.f32 %v303_v45 }
 0x32e   : > { %690 = vpow2.f32 %v296_v46 }
 0x333   : > { %v689_v47 = vpop.eup %688 }
 0x334   : > { %v691_v48 = vpop.eup %690  ;;  %324 = vrot.lane.b32.xlu2 %v689_v47, %s836_s17 }
 0x335   : > { %v305_v49 = vsel %vm192_vm0, %v691_v48, 0.0 }
 0x336   : > { %306 = vadd.xlane.f32.xlu0 %v305_v49 }
 0x38e   : > { %v325_v50 = vpop.permute.xlu2 %324 }
 0x38f   : > { %v327_v51 = vsel %vm192_vm0, %v325_v50, 0.0 }
 0x390   : > { %328 = vadd.xlane.f32.xlu0 %v327_v51  ;;  %v190_v51 = vld [vmem:[#allocation5 + $0x40] sm:$0xff] }
 0x391   : > { %484 = vmatpush.msrb.mxu0 %v190_v51 }
 0x3a4   : > { %259 = vrot.lane.b32.xlu0 %v248_v32, %s837_s27 }
 0x3a9   : > { %v307_v52 = vpop.xlane.xlu0 %306 }
 0x3aa   : > { %692 = vrcp.f32 %v307_v52  ;;  %vm313_vm8 = vweird.f32 %v307_v52  ;;  %v319_v62 = vand.u32 2147483648, %v307_v52  ;;  %v317_v1 = vand.u32 2147483647, %v307_v52 }
 0x3ac   : > { %v320_v6 = vor.u32 1.1754944e-38, %v319_v62  ;;  %vm318_vm13 = vcmp.eq.f32.partialorder %v317_v1, 8.507059e+37 }
 0x3b0   : > { %v693_v53 = vpop.eup %692 }
 0x3b1   : > { %v309_v54 = vmul.f32 %v693_v53, %v307_v52  ;;  %vm314_vm7 = vweird.f32 %v693_v53 }
 0x3b2   : > { %vm315_vm10 = vmor %vm313_vm8, %vm314_vm7 }
 0x3b3   : > { %v310_v56 = vsub.f32 1.0, %v309_v54  ;;  %v189_v54 = vld [vmem:[#allocation5 + $0x38] sm:$0xff] }
 0x3b4   : > { %485 = vmatpush.msrb.mxu0 %v189_v54 }
 0x3b5   : > { %v311_v57 = vmul.f32 %v693_v53, %v310_v56  ;;  %v188_v56 = vld [vmem:[#allocation5 + $0x30] sm:$0xff] }
 0x3b6   : > { %486 = vmatpush.msrb.mxu0 %v188_v56 }
 0x3b7   : > { %v312_v60 = vadd.f32 %v693_v53, %v311_v57 }
 0x3b9   : > { %v316_v5 = vsel %vm315_vm10, %v693_v53, %v312_v60 }
 0x3ba   : > { %v321_v10 = vsel %vm318_vm13, %v320_v6, %v316_v5 }
 0x3bb   : > { %v345_v14 = vmul.f32 %v691_v48, %v321_v10 }
 0x403   : > { %v329_v55 = vpop.xlane.xlu0 %328 }
 0x404   : > { %694 = vrcp.f32 %v329_v55  ;;  %v341_v63 = vand.u32 2147483648, %v329_v55  ;;  %v339_v3 = vand.u32 2147483647, %v329_v55  ;;  %vm335_vm11 = vweird.f32 %v329_v55 }
 0x406   : > { %v342_v7 = vor.u32 1.1754944e-38, %v341_v63  ;;  %vm340_vm14 = vcmp.eq.f32.partialorder %v339_v3, 8.507059e+37 }
 0x40a   : > { %v695_v58 = vpop.eup %694 }
 0x40b   : > { %v331_v59 = vmul.f32 %v695_v58, %v329_v55  ;;  %vm336_vm9 = vweird.f32 %v695_v58 }
 0x40c   : > { %vm337_vm12 = vmor %vm335_vm11, %vm336_vm9  ;;  %vm468_vm9 = vcmask 261120  }
 0x40d   : > { %v332_v61 = vsub.f32 1.0, %v331_v59 }
 0x40f   : > { %v333_v2 = vmul.f32 %v695_v58, %v332_v61 }
 0x411   : > { %v334_v4 = vadd.f32 %v695_v58, %v333_v2 }
 0x413   : > { %v338_v9 = vsel %vm337_vm12, %v695_v58, %v334_v4  ;;  %v187_v58 = vld [vmem:[#allocation5 + $0x28] sm:$0xff] }
 0x414   : > { %v343_v11 = vsel %vm340_vm14, %v342_v7, %v338_v9  ;;  %487 = vmatpush.msrb.mxu0 %v187_v58 }
 0x415   : > { %v346_v12 = vmul.f32 %v689_v47, %v343_v11 }
 0x416   : > { %v260_v13 = vpop.permute.xlu0 %259 }
 0x417   : > { %605 = vmatpush.msk.msra.mxu2 %vm604_vm15, %v260_v13  ;;  %v347_v15 = vsel %vm192_vm0, %v345_v14, %v346_v12 }
 0x419   : > { %606 = vmatpush.msk.msra.mxu2 %vm252_vm5, %v260_v13 }
 0x41a   : > { %607 = vmatmul.msk.f32.vlgmr.msra.gmra.mxu2 %vm348_vm1, %v347_v15 }
 0x49d   : > { %v369_v16 = vpop.f32.mrf.mxu2 }
 0x49e   : > { %v988_v17 = vadd.f32 %v369_v16, %v958_v0 }
 0x4a0   : > { %v373_v18 = vsel %vm192_vm0, %v988_v17, 0.0 }
 0x4a1   : > { %374 = vadd.xlane.f32.xlu2 %v373_v18 }
 0x514   : > { %v375_v19 = vpop.xlane.xlu2 %374 }
 0x515   : > { %v376_v20 = vmul.f32 %v375_v19, %v962_v8 }
 0x517   : > { %v377_v21 = vsub.f32 %v988_v17, %v376_v20 }
 0x519   : > { %v378_v22 = vmul.f32 %v377_v21, %v377_v21 }
 0x51b   : > { %v379_v23 = vsel %vm192_vm0, %v378_v22, 0.0 }
 0x51c   : > { %380 = vadd.xlane.f32.xlu1 %v379_v23  ;;  %v683_v23 = vld [vmem:[#allocation5 + $0x48] ss:$0 sm:$0xff] }
 0x58f   : > { %v381_v25 = vpop.xlane.xlu1 %380 }
 0x590   : > { %v382_v26 = vmul.f32 %v381_v25, %v962_v8  ;;  %v682_v8 = vld [vmem:[#allocation5 + $0x20] ss:$0 sm:$0xff] }
 0x592   : > { %v383_v0 = vadd.f32 1e-05, %v382_v26 }
 0x594   : > { %696 = vrsqrt.f32 %v383_v0  ;;  %vm390_vm3 = vweird.f32 %v383_v0 }
 0x59a   : > { %v697_v27 = vpop.eup %696 }
 0x59b   : > { %v385_v28 = vmul.f32 %v697_v27, %v383_v0  ;;  %vm391_vm2 = vweird.f32 %v697_v27 }
 0x59c   : > { %vm392_vm4 = vmor %vm390_vm3, %vm391_vm2 }
 0x59d   : > { %v386_v29 = vmul.f32 %v697_v27, %v385_v28 }
 0x59f   : > { %v387_v30 = vmul.f32 0.5, %v386_v29 }
 0x5a1   : > { %v388_v31 = vsub.f32 1.5, %v387_v30 }
 0x5a3   : > { %v389_v32 = vmul.f32 %v697_v27, %v388_v31 }
 0x5a5   : > { %v393_v34 = vsel %vm392_vm4, %v697_v27, %v389_v32 }
 0x5a6   : > { %v394_v35 = vmul.f32 %v393_v34, %v377_v21 }
 0x5a8   : > { %v396_v37 = vmul.f32 %v680_v33, %v394_v35 }
 0x5aa   : > { %v398_v38 = vadd.f32 %v681_v36, %v396_v37 }
 0x5ac   : > { %608 = vmatmul.msk.f32.vlgmr.msra.gmra.mxu3 %vm192_vm0, %v398_v38 }
 0x62f   : > { %v420_v39 = vpop.f32.mrf.mxu3 }
 0x630   : > { %v421_v40 = vadd.f32 %v682_v8, %v420_v39 }
 0x632   : > { %v424_v41 = vmul.f32 0.70710677, %v421_v40  ;;  %v423_v20 = vmul.f32 0.5, %v421_v40 }
 0x634   : > { %v425_v42 = vmul.f32 %v424_v41, %v424_v41 }
 0x636   : > { %v426_v43 = vmin.f32 %v425_v42, 16.0 }
 0x638   : > { %v427_v44 = vmul.f32 2.1237322e-06, %v426_v43  ;;  %v438_v45 = vmul.f32 3.8918573e-05, %v426_v43 }
 0x63a   : > { %v428_v46 = vadd.f32 0.00028619796, %v427_v44  ;;  %v439_v47 = vadd.f32 0.001143296, %v438_v45 }
 0x63c   : > { %v429_v48 = vmul.f32 %v428_v46, %v426_v43  ;;  %v440_v49 = vmul.f32 %v439_v47, %v426_v43 }
 0x63e   : > { %v441_v50 = vadd.f32 0.014752088, %v440_v49  ;;  %v430_v52 = vadd.f32 0.0036580483, %v429_v48 }
 0x640   : > { %v442_v53 = vmul.f32 %v441_v50, %v426_v43  ;;  %v431_v57 = vmul.f32 %v430_v52, %v426_v43 }
 0x642   : > { %v443_v55 = vadd.f32 0.112945676, %v442_v53  ;;  %v432_v61 = vadd.f32 0.05243302, %v431_v57 }
 0x644   : > { %v444_v59 = vmul.f32 %v443_v55, %v426_v43  ;;  %v433_v1 = vmul.f32 %v432_v61, %v426_v43 }
 0x646   : > { %v445_v60 = vadd.f32 0.4994258, %v444_v59  ;;  %v434_v2 = vadd.f32 0.18741608, %v433_v1 }
 0x648   : > { %v446_v62 = vmul.f32 %v445_v60, %v426_v43  ;;  %v435_v4 = vmul.f32 %v434_v2, %v426_v43 }
 0x64a   : > { %v447_v63 = vadd.f32 1.0, %v446_v62  ;;  %v436_v9 = vadd.f32 1.1283791, %v435_v4 }
 0x64c   : > { %698 = vrcp.f32 %v447_v63  ;;  %v459_v7 = vand.u32 2147483648, %v447_v63  ;;  %v457_v11 = vand.u32 2147483647, %v447_v63  ;;  %vm453_vm6 = vweird.f32 %v447_v63 }
 0x64d   : > { %v437_v14 = vmul.f32 %v436_v9, %v424_v41 }
 0x64e   : > { %v460_v13 = vor.u32 1.1754944e-38, %v459_v7  ;;  %vm458_vm8 = vcmp.eq.f32.partialorder %v457_v11, 8.507059e+37 }
 0x652   : > { %v699_v3 = vpop.eup %698 }
 0x653   : > { %v449_v5 = vmul.f32 %v699_v3, %v447_v63  ;;  %vm454_vm5 = vweird.f32 %v699_v3 }
 0x654   : > { %vm455_vm7 = vmor %vm453_vm6, %vm454_vm5 }
 0x655   : > { %v450_v6 = vsub.f32 1.0, %v449_v5 }
 0x657   : > { %v451_v10 = vmul.f32 %v699_v3, %v450_v6 }
 0x659   : > { %v452_v12 = vadd.f32 %v699_v3, %v451_v10 }
 0x65b   : > { %v456_v15 = vsel %vm455_vm7, %v699_v3, %v452_v12 }
 0x65c   : > { %v461_v16 = vsel %vm458_vm8, %v460_v13, %v456_v15 }
 0x65d   : > { %v462_v18 = vmul.f32 %v461_v16, %v437_v14 }
 0x65f   : > { %v609_v19 = vclamps-f32 %v462_v18, 1.0 }
 0x661   : > { %v465_v21 = vadd.f32 1.0, %v609_v19 }
 0x663   : > { %v466_v22 = vmul.f32 %v465_v21, %v423_v20 }
 0x665   : > { %610 = vmatmul.msk.f32.vlgmr.msrb.gmra.mxu0 %vm468_vm9, %v466_v22 }
 0x6e2   : > { %v489_v24 = vpop.f32.mrf.mxu0 }
 0x6e3   : > { %v490_v25 = vadd.f32 %v683_v23, %v489_v24 }
 0x6e5   : > { %v492_v26 = vadd.f32 %v490_v25, %v988_v17 }
 0x6e7   : > { %493 = vst.msk [vmem:[%s177_s15] sm:$0xff] %vm192_vm0, %v492_v26 }
 0x6e8   : > { %787 = shalt.err (!%p784_p9)
}
 0x6e9   : > { %621 = dma.vmem_to_hbm [thread:$0]  (%p913_p13), %s508_s18, 128, %s510_s19, %s495_s20  }
 0x6ea PF: > { %s521_s29 = sand.u32 1, %s818_s9   ;;  %p1042_p10 = scmp.ge.s32.totalorder %s830_s12, 2 }
 0x6eb   : > { %s522_s5 = scalar_lea.sflag [#allocation4], %s521_s29 }
 0x6ec   : > { %p632_p11 = pnand %p1042_p10, %p918_p4 }
 0x6ee   : > { %p633_p0 = pneg %p632_p11 }
 0x6f0   : > { %813 = dma.done.wait (%p633_p0), %s522_s5, 128  }
 0x6f1   : > { %815 = vsyncadd (%p633_p0), %s522_s5, 4294967168  ;;  %p16_p2 = scmp.ge.s32.totalorder %s893_s23, 4   ;;  %s1043_s9 = smov %s822_s10 }
 0x6f2   : > { %s1044_s10 = smov %s826_s11  ;;  %s1045_s11 = smov %s905_s26 }
 0x6f3   : > { %s1046_s12 = smov %s893_s23  ;;  %18 = sbr.rel (!%p16_p2) target bundleno = 6 (0x6), region = 77 }
 0x6f8   :  { %528 = vsyncpa [#allocation3], 1 }
 0x6f9   :  { %530 = vsyncpa [#allocation3 + $0x1], 1 }
 0x6fa   :  { %531 = vsyncpa [#allocation6], 1 }
 0x6fb   :  { %532 = vsyncpa [#allocation4], 1 }
 0x6fc   :  { %534 = vsyncpa [#allocation4 + $0x1], 1 }

</bundles_post_ra>
